<compile_context>
chip_gen: v7x
topology: tpu7x:2x2x1
jax: 0.10.0
libtpu: 0.0.40
codegen_flags: <defaults>
</compile_context>

<pallas_src>
import functools

import jax
import jax.numpy as jnp
from jax.experimental import pallas as pl
from jax.experimental.pallas import tpu as pltpu

LANE = 128
TARGET_BLOCK_BYTES = 1 << 20   # ~1 MiB per input buffer: >=85% of HBM BW knee


# ----------------------------- chip / layout helpers --------------------------

@functools.lru_cache(maxsize=None)
def _num_reduce_splits():
    """Leading 'parallel' split count: 2 only on 2-TensorCore chips (v7x)."""
    try:
        kind = jax.devices()[0].device_kind.lower()
    except Exception:
        return 1
    return 2 if ("v7" in kind or "7x" in kind) else 1


def _as_rows_lanes(x):
    """View tensor as (rows, 128). Free reshape when numel % 128 == 0."""
    flat = x.reshape(-1)
    n = flat.shape[0]
    pad = (-n) % LANE
    if pad:
        # TODO(synk): mask the ragged lane tail in-kernel (lane iota vs numel)
        # to avoid this copy; it is only taken when numel % 128 != 0.
        flat = jnp.concatenate([flat, jnp.zeros((pad,), flat.dtype)])
    return flat.reshape(-1, LANE)


def _choose_block_rows(rows, itemsize, max_block_rows=None):
    """Dtype-aware streaming block: ~1 MiB per input buffer, sublane aligned."""
    target = max(8, TARGET_BLOCK_BYTES // (LANE * int(itemsize)))
    if max_block_rows is not None:
        target = max(8, min(target, int(max_block_rows)))
    target = (target // 8) * 8
    return rows if rows <= target else target


# ----------------------------- reduction kernels ------------------------------

def _reduce_unweighted(p2, t2, *, max_block_rows=None):
    """sum(|p - t|) over a (rows, 128) view. Returns an f32 scalar."""
    rows = p2.shape[0]
    block_rows = _choose_block_rows(rows, p2.dtype.itemsize, max_block_rows)
    nblocks = pl.cdiv(rows, block_rows)
    nsplit = _num_reduce_splits()
    steps = pl.cdiv(nblocks, nsplit)
    sub = 8 if block_rows % 8 == 0 else 1
    # Row masking is only needed for a partial last block or over-scheduled
    # (clamped) split blocks; decided statically so full blocks stay unmasked.
    has_tail = (rows % block_rows != 0) or (nsplit * steps != nblocks)

    def kernel(p_ref, t_ref, o_ref, acc_ref):
        s = pl.program_id(0)
        j = pl.program_id(1)

        @pl.when(j == 0)
        def _init():
            acc_ref[...] = jnp.zeros_like(acc_ref)

        diff = jnp.abs(p_ref[...].astype(jnp.float32)
                       - t_ref[...].astype(jnp.float32))

        def _accum(x):
            if sub == 8:
                # pure VALU vreg adds; cross-sublane reduce deferred to finalize
                acc_ref[...] += jnp.sum(x.reshape(-1, 8, LANE), axis=0)
            else:
                acc_ref[...] += jnp.sum(x, axis=0, keepdims=True)

        if has_tail:
            blk = s * steps + j

            @pl.when(blk < nblocks - 1)
            def _full():
                _accum(diff)

            @pl.when(blk >= nblocks - 1)
            def _edge():
                gid = blk * block_rows + jax.lax.broadcasted_iota(
                    jnp.int32, (block_rows, LANE), 0)
                _accum(jnp.where(gid < rows, diff, 0.0))
        else:
            _accum(diff)

        @pl.when(j == steps - 1)
        def _fin():
            o_ref[0] = jnp.sum(acc_ref[...], axis=0, keepdims=True)

    in_map = lambda s, j: (jnp.minimum(s * steps + j, nblocks - 1), 0)
    in_spec = pl.BlockSpec((block_rows, LANE), in_map)
    out_spec = pl.BlockSpec((1, 1, LANE), lambda s, j: (s, 0, 0))

    partials = pl.pallas_call(
        kernel,
        out_shape=jax.ShapeDtypeStruct((nsplit, 1, LANE), jnp.float32),
        grid=(nsplit, steps),
        in_specs=[in_spec, in_spec],
        out_specs=out_spec,
        scratch_shapes=[pltpu.VMEM((sub, LANE), jnp.float32)],
        compiler_params=pltpu.CompilerParams(
            dimension_semantics=("parallel", "arbitrary")),
        cost_estimate=pl.CostEstimate(
            flops=3 * p2.size, transcendentals=0,
            bytes_accessed=p2.nbytes + t2.nbytes + nsplit * LANE * 4),
    )(p2, t2)
    # Tiny (nsplit,1,128) partials; XLA fuses this sum with the scalar epilogue.
    return jnp.sum(partials)


def _reduce_weighted(p2, t2, w2, *, max_block_rows=None):
    """(sum(|p - t| * w), sum(w)) over a (rows, 128) view. f32 scalars."""
    rows = p2.shape[0]
    block_rows = _choose_block_rows(rows, p2.dtype.itemsize, max_block_rows)
    nblocks = pl.cdiv(rows, block_rows)
    nsplit = _num_reduce_splits()
    steps = pl.cdiv(nblocks, nsplit)
    sub = 8 if block_rows % 8 == 0 else 1
    has_tail = (rows % block_rows != 0) or (nsplit * steps != nblocks)

    def kernel(p_ref, t_ref, w_ref, ol_ref, ow_ref, accl_ref, accw_ref):
        s = pl.program_id(0)
        j = pl.program_id(1)

        @pl.when(j == 0)
        def _init():
            accl_ref[...] = jnp.zeros_like(accl_ref)
            accw_ref[...] = jnp.zeros_like(accw_ref)

        pf = p_ref[...].astype(jnp.float32)
        tf = t_ref[...].astype(jnp.float32)
        wf = w_ref[...].astype(jnp.float32)
        term = jnp.abs(pf - tf) * wf

        def _accum(t, w):
            if sub == 8:
                accl_ref[...] += jnp.sum(t.reshape(-1, 8, LANE), axis=0)
                accw_ref[...] += jnp.sum(w.reshape(-1, 8, LANE), axis=0)
            else:
                accl_ref[...] += jnp.sum(t, axis=0, keepdims=True)
                accw_ref[...] += jnp.sum(w, axis=0, keepdims=True)

        if has_tail:
            blk = s * steps + j

            @pl.when(blk < nblocks - 1)
            def _full():
                _accum(term, wf)

            @pl.when(blk >= nblocks - 1)
            def _edge():
                gid = blk * block_rows + jax.lax.broadcasted_iota(
                    jnp.int32, (block_rows, LANE), 0)
                valid = gid < rows
                _accum(jnp.where(valid, term, 0.0),
                       jnp.where(valid, wf, 0.0))
        else:
            _accum(term, wf)

        @pl.when(j == steps - 1)
        def _fin():
            ol_ref[0] = jnp.sum(accl_ref[...], axis=0, keepdims=True)
            ow_ref[0] = jnp.sum(accw_ref[...], axis=0, keepdims=True)

    in_map = lambda s, j: (jnp.minimum(s * steps + j, nblocks - 1), 0)
    in_spec = pl.BlockSpec((block_rows, LANE), in_map)
    out_spec = pl.BlockSpec((1, 1, LANE), lambda s, j: (s, 0, 0))

    loss_p, w_p = pl.pallas_call(
        kernel,
        out_shape=(jax.ShapeDtypeStruct((nsplit, 1, LANE), jnp.float32),
                   jax.ShapeDtypeStruct((nsplit, 1, LANE), jnp.float32)),
        grid=(nsplit, steps),
        in_specs=[in_spec, in_spec, in_spec],
        out_specs=(out_spec, out_spec),
        scratch_shapes=[pltpu.VMEM((sub, LANE), jnp.float32),
                        pltpu.VMEM((sub, LANE), jnp.float32)],
        compiler_params=pltpu.CompilerParams(
            dimension_semantics=("parallel", "arbitrary")),
        cost_estimate=pl.CostEstimate(
            flops=5 * p2.size, transcendentals=0,
            bytes_accessed=p2.nbytes + t2.nbytes + w2.nbytes
                           + 2 * nsplit * LANE * 4),
    )(p2, t2, w2)
    return jnp.sum(loss_p), jnp.sum(w_p)


# ----------------------------- elementwise kernel -----------------------------

def _elementwise(p2, t2, w2, *, loss_weight, out_dtype, max_block_rows=None):
    """loss_weight * |p - t| (* w) elementwise on the (rows, 128) view."""
    rows = p2.shape[0]
    block_rows = _choose_block_rows(rows, p2.dtype.itemsize, max_block_rows)
    nblocks = pl.cdiv(rows, block_rows)
    spec = pl.BlockSpec((block_rows, LANE), lambda i: (i, 0))
    scale = None if float(loss_weight) == 1.0 else float(loss_weight)

    if w2 is None:
        def kernel(p_ref, t_ref, o_ref):
            # Native-dtype compute: no f32 round trip (bf16 runs directly on
            # the v6e/v7x VPU; Mosaic widens internally on v5e).
            d = jnp.abs(p_ref[...] - t_ref[...])
            if scale is not None:
                d = d * jnp.asarray(scale, d.dtype)
            o_ref[...] = d.astype(o_ref.dtype)
        operands = (p2, t2)
        in_specs = [spec, spec]
        in_bytes = p2.nbytes + t2.nbytes
        flops = 2 * p2.size
    else:
        def kernel(p_ref, t_ref, w_ref, o_ref):
            d = jnp.abs(p_ref[...] - t_ref[...]) * w_ref[...]
            if scale is not None:
                d = d * jnp.asarray(scale, d.dtype)
            o_ref[...] = d.astype(o_ref.dtype)
        operands = (p2, t2, w2)
        in_specs = [spec, spec, spec]
        in_bytes = p2.nbytes + t2.nbytes + w2.nbytes
        flops = 3 * p2.size

    out_bytes = rows * LANE * jnp.dtype(out_dtype).itemsize
    return pl.pallas_call(
        kernel,
        out_shape=jax.ShapeDtypeStruct((rows, LANE), out_dtype),
        grid=(nblocks,),
        in_specs=in_specs,
        out_specs=spec,
        compiler_params=pltpu.CompilerParams(
            dimension_semantics=("parallel",)),
        cost_estimate=pl.CostEstimate(
            flops=flops, transcendentals=0,
            bytes_accessed=in_bytes + out_bytes),
    )(*operands)


# ----------------------------- module ----------------------------------------

class L1Loss:
    """JAX/Pallas port of basicsr L1Loss (MAE).

    loss_weight * weight_reduce_loss(|pred - target|, weight, reduction)
    """

    def __init__(self, loss_weight=1.0, reduction="mean"):
        if reduction not in ("none", "mean", "sum"):
            raise ValueError(
                f"Unsupported reduction mode: {reduction}. "
                "Supported ones are: ['none', 'mean', 'sum']")
        self.loss_weight = float(loss_weight)
        self.reduction = reduction

    def __call__(self, pred, target, weight=None, **kwargs):
        numel = pred.size
        p2 = _as_rows_lanes(pred)
        t2 = _as_rows_lanes(target)

        w2 = None
        if weight is not None:
            if weight.shape != pred.shape:
                # basicsr allows e.g. C == 1 weights; broadcasting to full shape
                # reproduces its `weight.sum() * loss.size(1)` normalization.
                # TODO(synk): keep the small weight resident in VMEM and express
                # this broadcast in the weight BlockSpec index_map instead of
                # materializing a pred-sized tensor in HBM.
                weight = jnp.broadcast_to(weight, pred.shape)
            w2 = _as_rows_lanes(weight)

        if self.reduction == "none":
            out2 = _elementwise(p2, t2, w2, loss_weight=self.loss_weight,
                                out_dtype=pred.dtype)
            flat = out2.reshape(-1)
            if flat.shape[0] != numel:    # only when the lane-pad path was taken
                flat = flat[:numel]
            return flat.reshape(pred.shape)

        if w2 is None:
            loss_sum = _reduce_unweighted(p2, t2)
            if self.reduction == "sum":
                return self.loss_weight * loss_sum
            return self.loss_weight * (loss_sum / numel)

        loss_sum, w_sum = _reduce_weighted(p2, t2, w2)
        if self.reduction == "sum":
            return self.loss_weight * loss_sum
        # weighted mean follows basicsr: loss.sum() / weight.sum()
        return self.loss_weight * (loss_sum / w_sum)


# ----------------------------- demo -------------------------------------------

if __name__ == "__main__":
    key = jax.random.PRNGKey(0)
    k1, k2, k3, k4, k5 = jax.random.split(key, 5)

    N, C, H, W = 2, 4, 16, 16
    pred = jax.random.normal(k1, (N, C, H, W), dtype=jnp.float32)
    target = jax.random.normal(k2, (N, C, H, W), dtype=jnp.float32)
    weight = jax.random.uniform(k3, (N, C, H, W), dtype=jnp.float32)

    loss_fn = L1Loss(loss_weight=1.0, reduction="mean")

    # unweighted mean
    out = jax.block_until_ready(loss_fn(pred, target))
    ref = jnp.mean(jnp.abs(pred - target))
    assert jnp.allclose(out, ref, rtol=1e-5, atol=1e-5), (out, ref)

    # weighted mean (basicsr: loss.sum() / weight.sum())
    out_w = jax.block_until_ready(loss_fn(pred, target, weight))
    ref_w = jnp.sum(jnp.abs(pred - target) * weight) / jnp.sum(weight)
    assert jnp.allclose(out_w, ref_w, rtol=1e-5, atol=1e-5), (out_w, ref_w)

    # reduction='none'
    out_none = jax.block_until_ready(L1Loss(reduction="none")(pred, target))
    assert out_none.shape == pred.shape and out_none.dtype == pred.dtype
    assert jnp.allclose(out_none, jnp.abs(pred - target), rtol=1e-5, atol=1e-5)

    # reduction='sum'
    out_sum = jax.block_until_ready(L1Loss(reduction="sum")(pred, target))
    assert jnp.allclose(out_sum, jnp.sum(jnp.abs(pred - target)),
                        rtol=1e-5, atol=1e-4)

    # Ragged shape (numel not a multiple of 128) exercises the lane-tail path.
    pr = jax.random.normal(k4, (2, 4, 10, 20), dtype=jnp.float32)
    tr = jax.random.normal(k5, (2, 4, 10, 20), dtype=jnp.float32)
    out_r = jax.block_until_ready(L1Loss(reduction="mean")(pr, tr))
    assert jnp.allclose(out_r, jnp.mean(jnp.abs(pr - tr)), rtol=1e-5, atol=1e-5)
    out_rn = jax.block_until_ready(L1Loss(reduction="none")(pr, tr))
    assert jnp.allclose(out_rn, jnp.abs(pr - tr), rtol=1e-5, atol=1e-5)

    # Tiny max_block_rows forces a multi-block grid with a partial final block
    # (and, on v7x, clamped split indices) -> exercises the hoisted edge mask.
    p2 = _as_rows_lanes(pr)
    t2 = _as_rows_lanes(tr)
    small = jax.block_until_ready(_reduce_unweighted(p2, t2, max_block_rows=8))
    assert jnp.allclose(small, jnp.sum(jnp.abs(pr - tr)), rtol=1e-5, atol=1e-4)

    # Weighted reduction with the tiny-block path as well.
    wr = jax.random.uniform(k3, (2, 4, 10, 20), dtype=jnp.float32)
    w2 = _as_rows_lanes(wr)
    ls, ws = _reduce_weighted(p2, t2, w2, max_block_rows=8)
    ls, ws = jax.block_until_ready((ls, ws))
    assert jnp.allclose(ls, jnp.sum(jnp.abs(pr - tr) * wr), rtol=1e-5, atol=1e-4)
    assert jnp.allclose(ws, jnp.sum(wr), rtol=1e-5, atol=1e-4)

    print("KERNEL_OK")
</pallas_src>

<mosaic_0001>
module attributes {stable_mosaic.version = 11 : i64} {
  func.func @kernel(%arg0: i32, %arg1: i32, %arg2: memref<16x128xf32, #tpu.memory_space<vmem>>, %arg3: memref<16x128xf32, #tpu.memory_space<vmem>>, %arg4: memref<1x1x128xf32, #tpu.memory_space<vmem>>, %arg5: memref<8x128xf32, #tpu.memory_space<vmem>>) attributes {dimension_semantics = [#tpu.dimension_semantics<parallel>, #tpu.dimension_semantics<arbitrary>], iteration_bounds = array<i64: 1, 1>, scalar_prefetch = 0 : i64, scratch_operands = 1 : i64, tpu.core_type = #tpu.core_type<tc>, window_params = [{transform_indices = @transform_0, window_bounds = array<i64: 16, 128>}, {transform_indices = @transform_1, window_bounds = array<i64: 16, 128>}, {transform_indices = @transform_2, window_bounds = array<i64: 1, 1, 128>}]} {
    %c0_i32 = arith.constant 0 : i32
    %0 = arith.cmpi eq, %arg1, %c0_i32 : i32
    %1 = arith.extui %0 : i1 to i32
    %c0_i32_0 = arith.constant 0 : i32
    %2 = arith.cmpi ne, %1, %c0_i32_0 : i32
    scf.if %2 {
      %cst_10 = arith.constant 0.000000e+00 : f32
      %15 = vector.broadcast %cst_10 : f32 to vector<8x128xf32>
      %c0_11 = arith.constant 0 : index
      %c0_12 = arith.constant 0 : index
      %16 = vector.load %arg5[%c0_11, %c0_12] : memref<8x128xf32, #tpu.memory_space<vmem>>, vector<8x128xf32>
      tpu.vector_store %arg5[%c0_11, %c0_12], %15 {strides = array<i32>} : memref<8x128xf32, #tpu.memory_space<vmem>>, vector<8x128xf32>,
    } else {
    }
    %c0 = arith.constant 0 : index
    %c0_1 = arith.constant 0 : index
    %3 = vector.load %arg2[%c0, %c0_1] : memref<16x128xf32, #tpu.memory_space<vmem>>, vector<16x128xf32>
    %c0_2 = arith.constant 0 : index
    %c0_3 = arith.constant 0 : index
    %4 = vector.load %arg3[%c0_2, %c0_3] : memref<16x128xf32, #tpu.memory_space<vmem>>, vector<16x128xf32>
    %5 = arith.subf %3, %4 : vector<16x128xf32>
    %6 = math.absf %5 : vector<16x128xf32>
    %c0_4 = arith.constant 0 : index
    %c0_5 = arith.constant 0 : index
    %7 = vector.load %arg5[%c0_4, %c0_5] : memref<8x128xf32, #tpu.memory_space<vmem>>, vector<8x128xf32>
    %8 = vector.shape_cast %6 : vector<16x128xf32> to vector<2x8x128xf32>
    %cst = arith.constant dense<0.000000e+00> : vector<8x128xf32>
    %9 = vector.multi_reduction <add>, %8, %cst [0] : vector<2x8x128xf32> to vector<8x128xf32>
    %10 = arith.addf %7, %9 : vector<8x128xf32>
    %c0_6 = arith.constant 0 : index
    %c0_7 = arith.constant 0 : index
    %11 = vector.load %arg5[%c0_6, %c0_7] : memref<8x128xf32, #tpu.memory_space<vmem>>, vector<8x128xf32>
    tpu.vector_store %arg5[%c0_6, %c0_7], %10 {strides = array<i32>} : memref<8x128xf32, #tpu.memory_space<vmem>>, vector<8x128xf32>,
    %c0_i32_8 = arith.constant 0 : i32
    %12 = arith.cmpi eq, %arg1, %c0_i32_8 : i32
    %13 = arith.extui %12 : i1 to i32
    %c0_i32_9 = arith.constant 0 : i32
    %14 = arith.cmpi ne, %13, %c0_i32_9 : i32
    scf.if %14 {
      %c0_10 = arith.constant 0 : index
      %c0_11 = arith.constant 0 : index
      %15 = vector.load %arg5[%c0_10, %c0_11] : memref<8x128xf32, #tpu.memory_space<vmem>>, vector<8x128xf32>
      %cst_12 = arith.constant dense<0.000000e+00> : vector<128xf32>
      %16 = vector.multi_reduction <add>, %15, %cst_12 [0] : vector<8x128xf32> to vector<128xf32>
      %17 = vector.shape_cast %16 : vector<128xf32> to vector<1x128xf32>
      %c0_13 = arith.constant 0 : index
      %c0_14 = arith.constant 0 : index
      %c0_15 = arith.constant 0 : index
      %18 = vector.load %arg4[%c0_13, %c0_14, %c0_15] : memref<1x1x128xf32, #tpu.memory_space<vmem>>, vector<1x1x128xf32>
      %19 = vector.shape_cast %18 : vector<1x1x128xf32> to vector<1x128xf32>
      %20 = vector.shape_cast %17 : vector<1x128xf32> to vector<1x1x128xf32>
      tpu.vector_store %arg4[%c0_13, %c0_14, %c0_15], %20 {strides = array<i32>} : memref<1x1x128xf32, #tpu.memory_space<vmem>>, vector<1x1x128xf32>,
    } else {
    }
    return
  }
  func.func @transform_0(%arg0: i32, %arg1: i32) -> (i32, i32) {
    %c1_i32 = arith.constant 1 : i32
    %0 = arith.muli %arg0, %c1_i32 : i32
    %1 = arith.addi %0, %arg1 : i32
    %c0_i32 = arith.constant 0 : i32
    %2 = arith.minsi %1, %c0_i32 : i32
    %c0_i32_0 = arith.constant 0 : i32
    %c0_i32_1 = arith.constant 0 : i32
    return %2, %c0_i32_0 : i32, i32
  }
  func.func @transform_1(%arg0: i32, %arg1: i32) -> (i32, i32) {
    %c1_i32 = arith.constant 1 : i32
    %0 = arith.muli %arg0, %c1_i32 : i32
    %1 = arith.addi %0, %arg1 : i32
    %c0_i32 = arith.constant 0 : i32
    %2 = arith.minsi %1, %c0_i32 : i32
    %c0_i32_0 = arith.constant 0 : i32
    %c0_i32_1 = arith.constant 0 : i32
    return %2, %c0_i32_0 : i32, i32
  }
  func.func @transform_2(%arg0: i32, %arg1: i32) -> (i32, i32, i32) {
    %c0_i32 = arith.constant 0 : i32
    %c0_i32_0 = arith.constant 0 : i32
    %c0_i32_1 = arith.constant 0 : i32
    return %arg0, %c0_i32, %c0_i32_0 : i32, i32, i32
  }
}

</mosaic_0001>

<bundles_post_ra>
// kernel: tpu_custom_call.1
= control target key start
LH: loop header
LB: loop body
LE: loop exit
PB: predicated region body
PF: predicated region fallthrough
CT: control target
= control target key end

     0   :  { %7 = vsyncpa [#allocation4], 0  ;;  %s241_s0 = inlined_call_operand.hbm [shape: f32[16,128], index: 0, kind: input, shape index: {}]   ;;  %s242_s1 = inlined_call_operand.hbm [shape: f32[16,128], index: 1, kind: input, shape index: {}]   ;;  %s243_s2 = inlined_call_operand.hbm [shape: f32[1,1,128], index: 2, kind: output, shape index: {}]  }
   0x1   :  { %8 = vsyncpa [#allocation7], 0 }
   0x2   :  { %9 = vsyncpa [#allocation5], 0  ;;  %s185_s9 = smov [#allocation3]   ;;  %s113_s13 = scalar_lea.hbm %s241_s0, 256 }
   0x3   :  { %s21_s10 = sshll.u32 %s185_s9, 4  ;;  %p114_p0 = scmp.ne.s32.totalorder %s241_s0, %s113_s13  ;;  %s22_s10 = int_to_ptr.vmem [resolvable:$true] %s21_s10 }
   0x4   :  { %p117_p1 = scmp.lt.u32.totalorder %s113_s13, %s241_s0 }
   0x6   :  { %p119_p2 = pnand %p117_p1, %p114_p0 }
   0x8   :  { %122 = shalt.err (!%p119_p2)
}
   0x9   :  { %s123_s18 = scalar_lea.vmem %s22_s10, 256  ;;  %p128_p4 = scmp.lt.s32.totalorder %s22_s10, %s22_s10 }
   0xa   :  { %p124_p3 = scmp.ne.s32.totalorder %s22_s10, %s123_s18  ;;  %p129_p5 = scmp.lt.s32.totalorder %s123_s18, %s123_s18 }
   0xc   :  { %p130_p6 = por %p129_p5, %p128_p4 }
   0xe   :  { %p131_p7 = pnand %p130_p6, %p124_p3 }
  0x10   :  { %134 = shalt.err (!%p131_p7)
}
  0x11   :  { %s186_s19 = smov 128   ;;  %s187_s20 = smov 8  }
  0x12   :  { %27 = dma.hbm_to_vmem [thread:$0]  %s241_s0, 256, %s22_s10, [#allocation4], %s186_s19, %s186_s19, %s187_s20  }
  0x13   :  { %s188_s23 = smov [#allocation6]   ;;  %s135_s27 = scalar_lea.hbm %s242_s1, 256 }
  0x14   :  { %s39_s24 = sshll.u32 %s188_s23, 4  ;;  %p136_p8 = scmp.ne.s32.totalorder %s242_s1, %s135_s27  ;;  %s40_s24 = int_to_ptr.vmem [resolvable:$true] %s39_s24 }
  0x15   :  { %p139_p9 = scmp.lt.u32.totalorder %s135_s27, %s242_s1 }
  0x17   :  { %p141_p10 = pnand %p139_p9, %p136_p8 }
  0x19   :  { %144 = shalt.err (!%p141_p10)
}
  0x1a   :  { %s145_s4 = scalar_lea.vmem %s40_s24, 256  ;;  %p150_p12 = scmp.lt.s32.totalorder %s40_s24, %s40_s24 }
  0x1b   :  { %p146_p11 = scmp.ne.s32.totalorder %s40_s24, %s145_s4  ;;  %p151_p13 = scmp.lt.s32.totalorder %s145_s4, %s145_s4 }
  0x1d   :  { %p152_p0 = por %p151_p13, %p150_p12 }
  0x1f   :  { %p153_p1 = pnand %p152_p0, %p146_p11 }
  0x21   :  { %156 = shalt.err (!%p153_p1)
}
  0x22   :  { %45 = dma.hbm_to_vmem [thread:$0]  %s242_s1, 256, %s40_s24, [#allocation7], %s186_s19, %s186_s19, %s187_s20  }
  0x23   :  { %179 = dma.done.wait [#allocation4], 256  }
  0x24   :  { %180 = vsyncadd [#allocation4], 4294967040 }
  0x25   :  { %181 = dma.done.wait [#allocation7], 256  }
  0x26   :  { %182 = vsyncadd [#allocation7], 4294967040  ;;  %v65_v0 = vld [vmem:[#allocation3] sm:$0xff]  ;;  %v66_v1 = vld [vmem:[#allocation3 + $0x8] sm:$0xff]  ;;  %s189_s6 = smov [#allocation8]  }
  0x27   :  { %v67_v2 = vld [vmem:[#allocation6] sm:$0xff]  ;;  %v68_v3 = vld [vmem:[#allocation6 + $0x8] sm:$0xff]  ;;  %s94_s7 = sshll.u32 %s189_s6, 4  ;;  %s95_s7 = int_to_ptr.vmem [resolvable:$true] %s94_s7 }
  0x28   :  { %v69_v4 = vsub.f32 %v65_v0, %v67_v2  ;;  %v70_v5 = vsub.f32 %v66_v1, %v68_v3  ;;  %s157_s1 = scalar_lea.vmem %s95_s7, 16  ;;  %s161_s8 = scalar_lea.vmem %s95_s7, 32 }
  0x29   :  { %p158_p2 = scmp.ne.s32.totalorder %s95_s7, %s157_s1  ;;  %p162_p3 = scmp.lt.s32.totalorder %s95_s7, %s95_s7 }
  0x2a   :  { %v71_v6 = vand.u32 2147483647, %v69_v4  ;;  %v72_v7 = vand.u32 2147483647, %v70_v5  ;;  %p163_p4 = scmp.lt.s32.totalorder %s161_s8, %s157_s1 }
  0x2c   :  { %v74_v8 = vadd.f32 %v72_v7, %v71_v6  ;;  %p164_p5 = por %p163_p4, %p162_p3 }
  0x2e   :  { %v81_v9 = vrot.slane %v74_v8, 4  ;;  %p165_p6 = pnand %p164_p5, %p158_p2 }
  0x30   :  { %v82_v10 = vadd.f32 %v81_v9, %v74_v8 }
  0x32   :  { %v83_v11 = vrot.slane %v82_v10, 2 }
  0x34   :  { %v84_v12 = vadd.f32 %v83_v11, %v82_v10 }
  0x36   :  { %v85_v13 = vrot.slane %v84_v12, 1 }
  0x38   :  { %v86_v14 = vadd.f32 %v85_v13, %v84_v12 }
  0x3a   :  { %87 = vst [vmem:[#allocation8] sm:$0x1] %v86_v14 }
  0x3b   :  { %168 = shalt.err (!%p165_p6)
}
  0x3c   :  { %s169_s11 = scalar_lea.hbm %s243_s2, 16 }
  0x3d   :  { %p170_p7 = scmp.ne.s32.totalorder %s243_s2, %s169_s11  ;;  %p173_p8 = scmp.lt.u32.totalorder %s169_s11, %s243_s2 }
  0x3f   :  { %p175_p9 = pnand %p173_p8, %p170_p7 }
  0x41   :  { %178 = shalt.err (!%p175_p9)
}
  0x42   :  { %97 = dma.vmem_to_hbm [thread:$0]  %s95_s7, 16, %s243_s2, [#allocation5]  }
  0x43   :  { %183 = dma.done.wait [#allocation5], 16  }
  0x44   :  { %184 = vsyncadd [#allocation5], 4294967280 }
  0x45   :  { %101 = vsyncpa [#allocation4], 1 }
  0x46   :  { %102 = vsyncpa [#allocation7], 1 }
  0x47   :  { %103 = vsyncpa [#allocation5], 1 }

</bundles_post_ra>
